<compile_context>
chip_gen: v7x
topology: tpu7x:2x2x1
jax: 0.10.0
libtpu: 0.0.40
codegen_flags: <defaults>
</compile_context>

<pallas_src>
import math

import jax
import jax.numpy as jnp
from jax.experimental import pallas as pl
from jax.experimental.pallas import tpu as pltpu

# ---- "config" the PyTorch module expects (small synthetic sizes) ----
DIM = 32            # config.dim
SEQ_LEN = 8         # config.seq_len
BATCH = 2
NUM_EIGH = 8        # config.num_eigh (K spectral filters)
MLP_SCALE = 4       # config.mlp_scale
INTER = DIM * MLP_SCALE
RMS_EPS = 1.1920929e-07     # nn.RMSNorm(eps=None) => torch.finfo(float32).eps
# config.use_approx=True, config.use_hankel_L=False, config.use_flash_fft=False,
# config.bias=False, config.dropout=0.0 (eval forward; dropout is identity).


def _gelu_tanh(x):
    c = math.sqrt(2.0 / math.pi)
    return 0.5 * x * (1.0 + jnp.tanh(c * (x + 0.044715 * x * x * x)))


def stu_layer_kernel(x_ref, m_in_ref, phi_ref, w_gate_ref, w_up_ref,
                     w_down_ref, o_ref):
    # One grid step = one batch element's (S, D) slab; weights stay resident.
    S, D = x_ref.shape[1], x_ref.shape[2]

    x = x_ref[0]                                                  # (S, D) f32

    # ---- RMSNorm (stu_norm); gain pre-folded into m_in rows host-side ----
    xh = x * jax.lax.rsqrt(jnp.mean(x * x, axis=-1, keepdims=True) + RMS_EPS)

    # ---- STU (use_approx=True): input projection, bf16 weights, f32 acc ----
    xp = jnp.dot(xh.astype(jnp.bfloat16), m_in_ref[...],
                 preferred_element_type=jnp.float32)              # (S, D) f32

    # ---- causal depthwise spectral convolution (exact FFT-conv fold) ----
    # stu_out[t, d] = sum_s (1 + (-1)^s) * phi_proj[s, d] * xp[t - s, d]
    # Odd lags vanish, so only even lags are generated: each one is an XLU
    # sublane roll + causal mask + broadcast filter row (VPU), statically
    # unrolled. No shift-operator matmul, no concatenates.
    stu_out = xp * phi_ref[pl.ds(0, 1), :]                        # lag 0
    t_idx = jax.lax.broadcasted_iota(jnp.int32, (S, D), 0)
    for s in range(2, S, 2):                                      # static unroll
        shifted = pltpu.roll(xp, shift=s, axis=0)                 # xp[(t-s) mod S]
        shifted = jnp.where(t_idx >= s, shifted, 0.0)             # causal mask
        stu_out = stu_out + shifted * phi_ref[pl.ds(s, 1), :]

    # ---- residual ----
    x1 = x + stu_out

    # ---- RMSNorm (mlp_norm); gain pre-folded into W_gate/W_up rows ----
    x2 = x1 * jax.lax.rsqrt(jnp.mean(x1 * x1, axis=-1, keepdims=True) + RMS_EPS)
    x2b = x2.astype(jnp.bfloat16)

    # ---- MLP: gelu_tanh(gate) * up -> down, + residual ----
    gate = _gelu_tanh(jnp.dot(x2b, w_gate_ref[...],
                              preferred_element_type=jnp.float32))
    up = jnp.dot(x2b, w_up_ref[...], preferred_element_type=jnp.float32)
    down = jnp.dot((gate * up).astype(jnp.bfloat16), w_down_ref[...],
                   preferred_element_type=jnp.float32)

    o_ref[0] = x1 + down


def stu_layer(x, g_stu, m_inputs, stu_filters, m_filters,
              g_mlp, w_gate_t, w_up_t, w_down_t):
    B, S, D = x.shape
    inter = w_gate_t.shape[1]
    hp = jax.lax.Precision.HIGHEST

    # ---- host-side, parameter-only folds (exact; no activation data) ----
    # phi_proj = stu_filters @ M_filters   (STU.forward, use_approx=True)
    phi_proj = jnp.matmul(stu_filters, m_filters, precision=hp)          # (S, D)
    # use_hankel_L=False => U_plus + U_minus == causal conv with the combined
    # filter (1 + (-1)^s) * phi_proj[s]  (zero for odd lags).
    alt = jnp.where(jnp.arange(S) % 2 == 0, 2.0, 0.0).astype(jnp.float32)
    phi_eff = phi_proj * alt[:, None]                                    # (S, D)

    # Fold RMSNorm gains into the rows of the downstream weight matrices.
    m_in_eff = (g_stu.reshape(D, 1) * m_inputs).astype(jnp.bfloat16)     # (D, D)
    w_gate_eff = (g_mlp.reshape(D, 1) * w_gate_t).astype(jnp.bfloat16)   # (D, I)
    w_up_eff = (g_mlp.reshape(D, 1) * w_up_t).astype(jnp.bfloat16)       # (D, I)
    w_down_b = w_down_t.astype(jnp.bfloat16)                             # (I, D)

    return pl.pallas_call(
        stu_layer_kernel,
        out_shape=jax.ShapeDtypeStruct((B, S, D), jnp.float32),
        grid=(B,),
        in_specs=[
            pl.BlockSpec((1, S, D), lambda b: (b, 0, 0)),      # activations (stream)
            pl.BlockSpec((D, D), lambda b: (0, 0)),            # M_inputs (resident)
            pl.BlockSpec((S, D), lambda b: (0, 0)),            # folded spectral filter
            pl.BlockSpec((D, inter), lambda b: (0, 0)),        # W_gate^T
            pl.BlockSpec((D, inter), lambda b: (0, 0)),        # W_up^T
            pl.BlockSpec((inter, D), lambda b: (0, 0)),        # W_down^T
        ],
        out_specs=pl.BlockSpec((1, S, D), lambda b: (b, 0, 0)),
        compiler_params=pltpu.CompilerParams(
            dimension_semantics=("parallel",)),
    )(x, m_in_eff, phi_eff, w_gate_eff, w_up_eff, w_down_b)


# ---------------- pure-JAX reference (mirrors the torch forward, incl. FFT conv) ----------------
def reference_forward(x, g_stu, m_inputs, stu_filters, m_filters,
                      g_mlp, w_gate, w_up, w_down):
    B, S, D = x.shape
    n = 1 << math.ceil(math.log2(2 * S - 1))   # nearest_power_of_two(2S-1, round_up=True)
    hdot = lambda a, b: jnp.matmul(a, b, precision=jax.lax.Precision.HIGHEST)

    def rms(z, g):
        return z * jax.lax.rsqrt(jnp.mean(z * z, axis=-1, keepdims=True) + RMS_EPS) * g

    xn = rms(x, g_stu)
    x_proj = hdot(xn, m_inputs)                     # (B, S, D)
    phi_proj = hdot(stu_filters, m_filters)         # (S, D)

    # convolve(u=x_proj, v=phi_proj, n, use_approx=True)
    sgn = jnp.where(jnp.arange(S) % 2 == 1, -1.0, 1.0).astype(jnp.float32)[None, :, None]
    v = phi_proj.reshape(1, S, D, 1)
    Vf = jnp.fft.rfft(v, n=n, axis=1)
    U = jnp.stack([x_proj, x_proj * sgn], axis=-1)  # (B, S, D, 2)
    Uf = jnp.fft.rfft(U, n=n, axis=1)
    U_conv = jnp.fft.irfft(Vf * Uf, n=n, axis=1)[:, :S]
    U_plus, U_minus = U_conv[..., 0], U_conv[..., 1]
    U_minus = U_minus * sgn
    spectral = U_plus + U_minus                     # use_hankel_L = False

    x1 = x + spectral
    x2 = rms(x1, g_mlp)
    gate = _gelu_tanh(hdot(x2, w_gate.T))
    up = hdot(x2, w_up.T)
    return x1 + hdot(gate * up, w_down.T)


if __name__ == "__main__":
    key = jax.random.PRNGKey(0)
    ks = jax.random.split(key, 7)

    def init(k, shape, scale):
        return jax.random.normal(k, shape, jnp.float32) * scale

    # STU parameters (use_approx=True): M_inputs (d_in, d_out), M_filters (K, d_in);
    # stu_filters are the spectral filters phi of shape (seq_len, K).
    m_inputs = init(ks[0], (DIM, DIM), 0.05)
    m_filters = init(ks[1], (NUM_EIGH, DIM), 0.05)
    stu_filters = init(ks[2], (SEQ_LEN, NUM_EIGH), 0.5)

    # MLP parameters: torch nn.Linear weights are (out_features, in_features); bias=False.
    w_gate = init(ks[3], (INTER, DIM), 0.02)
    w_up = init(ks[4], (INTER, DIM), 0.02)
    w_down = init(ks[5], (DIM, INTER), 0.02)

    g_stu = jnp.ones((1, DIM), jnp.float32)   # RMSNorm weights (init = 1)
    g_mlp = jnp.ones((1, DIM), jnp.float32)

    x = jax.random.normal(ks[6], (BATCH, SEQ_LEN, DIM), jnp.float32)

    out = stu_layer(x, g_stu, m_inputs, stu_filters, m_filters,
                    g_mlp, w_gate.T, w_up.T, w_down.T)
    out = jax.block_until_ready(out)

    ref = reference_forward(x, g_stu, m_inputs, stu_filters, m_filters,
                            g_mlp, w_gate, w_up, w_down)
    ref = jax.block_until_ready(ref)

    assert out.shape == (BATCH, SEQ_LEN, DIM)
    assert bool(jnp.all(jnp.isfinite(out)))
    max_err = float(jnp.max(jnp.abs(out - ref)))
    assert max_err < 1e-2, f"kernel vs reference mismatch: max abs err = {max_err}"

    print("KERNEL_OK")
</pallas_src>

<mosaic_0001>
module attributes {stable_mosaic.version = 11 : i64} {
  func.func @stu_layer_kernel(%arg0: i32, %arg1: memref<1x8x32xf32, #tpu.memory_space<vmem>>, %arg2: memref<32x32xbf16, #tpu.memory_space<vmem>>, %arg3: memref<8x32xf32, #tpu.memory_space<vmem>>, %arg4: memref<32x128xbf16, #tpu.memory_space<vmem>>, %arg5: memref<32x128xbf16, #tpu.memory_space<vmem>>, %arg6: memref<128x32xbf16, #tpu.memory_space<vmem>>, %arg7: memref<1x8x32xf32, #tpu.memory_space<vmem>>) attributes {dimension_semantics = [#tpu.dimension_semantics<parallel>], iteration_bounds = array<i64: 2>, scalar_prefetch = 0 : i64, scratch_operands = 0 : i64, tpu.core_type = #tpu.core_type<tc>, window_params = [{transform_indices = @transform_0, window_bounds = array<i64: 1, 8, 32>}, {pipeline_mode = #tpu.pipeline_mode<synchronous>, transform_indices = @transform_1, window_bounds = array<i64: 32, 32>}, {pipeline_mode = #tpu.pipeline_mode<synchronous>, transform_indices = @transform_2, window_bounds = array<i64: 8, 32>}, {pipeline_mode = #tpu.pipeline_mode<synchronous>, transform_indices = @transform_3, window_bounds = array<i64: 32, 128>}, {pipeline_mode = #tpu.pipeline_mode<synchronous>, transform_indices = @transform_4, window_bounds = array<i64: 32, 128>}, {pipeline_mode = #tpu.pipeline_mode<synchronous>, transform_indices = @transform_5, window_bounds = array<i64: 128, 32>}, {transform_indices = @transform_6, window_bounds = array<i64: 1, 8, 32>}]} {
    %c0 = arith.constant 0 : index
    %c0_0 = arith.constant 0 : index
    %c0_1 = arith.constant 0 : index
    %0 = vector.load %arg1[%c0, %c0_0, %c0_1] : memref<1x8x32xf32, #tpu.memory_space<vmem>>, vector<1x8x32xf32>
    %1 = vector.shape_cast %0 : vector<1x8x32xf32> to vector<8x32xf32>
    %2 = arith.mulf %1, %1 : vector<8x32xf32>
    %cst = arith.constant dense<0.000000e+00> : vector<8xf32>
    %3 = vector.multi_reduction <add>, %2, %cst [1] : vector<8x32xf32> to vector<8xf32>
    %4 = vector.shape_cast %3 : vector<8xf32> to vector<8x1xf32>
    %cst_2 = arith.constant 3.200000e+01 : f32
    %5 = vector.broadcast %cst_2 : f32 to vector<8x1xf32>
    %6 = arith.divf %4, %5 : vector<8x1xf32>
    %cst_3 = arith.constant 1.1920929E-7 : f32
    %7 = vector.broadcast %cst_3 : f32 to vector<8x1xf32>
    %8 = arith.addf %6, %7 : vector<8x1xf32>
    %9 = math.rsqrt %8 : vector<8x1xf32>
    %10 = vector.broadcast %9 : vector<8x1xf32> to vector<8x32xf32>
    %11 = arith.mulf %1, %10 : vector<8x32xf32>
    %12 = arith.truncf %11 : vector<8x32xf32> to vector<8x32xbf16>
    %c0_4 = arith.constant 0 : index
    %c0_5 = arith.constant 0 : index
    %13 = vector.load %arg2[%c0_4, %c0_5] : memref<32x32xbf16, #tpu.memory_space<vmem>>, vector<32x32xbf16>
    %cst_6 = arith.constant dense<0.000000e+00> : vector<8x32xf32>
    %14 = tpu.matmul %12, %13, %cst_6 {dimension_numbers = #tpu.dot_dimension_numbers<[1], [0], [0], [1], [0, 0, 1, 1], [], []>} : vector<8x32xbf16>, vector<32x32xbf16>, vector<8x32xf32> -> vector<8x32xf32>
    %c0_7 = arith.constant 0 : index
    %c0_8 = arith.constant 0 : index
    %15 = vector.load %arg3[%c0_7, %c0_8] : memref<8x32xf32, #tpu.memory_space<vmem>>, vector<1x32xf32>
    %16 = vector.broadcast %15 : vector<1x32xf32> to vector<8x32xf32>
    %17 = arith.mulf %14, %16 : vector<8x32xf32>
    %18 = tpu.iota {dimensions = array<i32: 0>} : vector<8x32xi32>
    %c2_i32 = arith.constant 2 : i32
    %19 = tpu.dynamic_rotate %14 by %c2_i32 dim 0 : vector<8x32xf32>, i32 -> vector<8x32xf32>
    %c2_i32_9 = arith.constant 2 : i32
    %20 = vector.broadcast %c2_i32_9 : i32 to vector<8x32xi32>
    %21 = arith.cmpi sge, %18, %20 : vector<8x32xi32>
    %cst_10 = arith.constant 0.000000e+00 : f32
    %22 = vector.broadcast %cst_10 : f32 to vector<8x32xf32>
    %23 = arith.select %21, %19, %22 : vector<8x32xi1>, vector<8x32xf32>
    %c2 = arith.constant 2 : index
    %c0_11 = arith.constant 0 : index
    %24 = vector.load %arg3[%c2, %c0_11] : memref<8x32xf32, #tpu.memory_space<vmem>>, vector<1x32xf32>
    %25 = vector.broadcast %24 : vector<1x32xf32> to vector<8x32xf32>
    %26 = arith.mulf %23, %25 : vector<8x32xf32>
    %27 = arith.addf %17, %26 : vector<8x32xf32>
    %c4_i32 = arith.constant 4 : i32
    %28 = tpu.dynamic_rotate %14 by %c4_i32 dim 0 : vector<8x32xf32>, i32 -> vector<8x32xf32>
    %c4_i32_12 = arith.constant 4 : i32
    %29 = vector.broadcast %c4_i32_12 : i32 to vector<8x32xi32>
    %30 = arith.cmpi sge, %18, %29 : vector<8x32xi32>
    %cst_13 = arith.constant 0.000000e+00 : f32
    %31 = vector.broadcast %cst_13 : f32 to vector<8x32xf32>
    %32 = arith.select %30, %28, %31 : vector<8x32xi1>, vector<8x32xf32>
    %c4 = arith.constant 4 : index
    %c0_14 = arith.constant 0 : index
    %33 = vector.load %arg3[%c4, %c0_14] : memref<8x32xf32, #tpu.memory_space<vmem>>, vector<1x32xf32>
    %34 = vector.broadcast %33 : vector<1x32xf32> to vector<8x32xf32>
    %35 = arith.mulf %32, %34 : vector<8x32xf32>
    %36 = arith.addf %27, %35 : vector<8x32xf32>
    %c6_i32 = arith.constant 6 : i32
    %37 = tpu.dynamic_rotate %14 by %c6_i32 dim 0 : vector<8x32xf32>, i32 -> vector<8x32xf32>
    %c6_i32_15 = arith.constant 6 : i32
    %38 = vector.broadcast %c6_i32_15 : i32 to vector<8x32xi32>
    %39 = arith.cmpi sge, %18, %38 : vector<8x32xi32>
    %cst_16 = arith.constant 0.000000e+00 : f32
    %40 = vector.broadcast %cst_16 : f32 to vector<8x32xf32>
    %41 = arith.select %39, %37, %40 : vector<8x32xi1>, vector<8x32xf32>
    %c6 = arith.constant 6 : index
    %c0_17 = arith.constant 0 : index
    %42 = vector.load %arg3[%c6, %c0_17] : memref<8x32xf32, #tpu.memory_space<vmem>>, vector<1x32xf32>
    %43 = vector.broadcast %42 : vector<1x32xf32> to vector<8x32xf32>
    %44 = arith.mulf %41, %43 : vector<8x32xf32>
    %45 = arith.addf %36, %44 : vector<8x32xf32>
    %46 = arith.addf %1, %45 : vector<8x32xf32>
    %47 = arith.mulf %46, %46 : vector<8x32xf32>
    %cst_18 = arith.constant dense<0.000000e+00> : vector<8xf32>
    %48 = vector.multi_reduction <add>, %47, %cst_18 [1] : vector<8x32xf32> to vector<8xf32>
    %49 = vector.shape_cast %48 : vector<8xf32> to vector<8x1xf32>
    %cst_19 = arith.constant 3.200000e+01 : f32
    %50 = vector.broadcast %cst_19 : f32 to vector<8x1xf32>
    %51 = arith.divf %49, %50 : vector<8x1xf32>
    %cst_20 = arith.constant 1.1920929E-7 : f32
    %52 = vector.broadcast %cst_20 : f32 to vector<8x1xf32>
    %53 = arith.addf %51, %52 : vector<8x1xf32>
    %54 = math.rsqrt %53 : vector<8x1xf32>
    %55 = vector.broadcast %54 : vector<8x1xf32> to vector<8x32xf32>
    %56 = arith.mulf %46, %55 : vector<8x32xf32>
    %57 = arith.truncf %56 : vector<8x32xf32> to vector<8x32xbf16>
    %c0_21 = arith.constant 0 : index
    %c0_22 = arith.constant 0 : index
    %58 = vector.load %arg4[%c0_21, %c0_22] : memref<32x128xbf16, #tpu.memory_space<vmem>>, vector<32x128xbf16>
    %cst_23 = arith.constant dense<0.000000e+00> : vector<8x128xf32>
    %59 = tpu.matmul %57, %58, %cst_23 {dimension_numbers = #tpu.dot_dimension_numbers<[1], [0], [0], [1], [0, 0, 1, 1], [], []>} : vector<8x32xbf16>, vector<32x128xbf16>, vector<8x128xf32> -> vector<8x128xf32>
    %cst_24 = arith.constant 5.000000e-01 : f32
    %60 = vector.broadcast %cst_24 : f32 to vector<8x128xf32>
    %61 = arith.mulf %60, %59 : vector<8x128xf32>
    %cst_25 = arith.constant 4.471500e-02 : f32
    %62 = vector.broadcast %cst_25 : f32 to vector<8x128xf32>
    %63 = arith.mulf %62, %59 : vector<8x128xf32>
    %64 = arith.mulf %63, %59 : vector<8x128xf32>
    %65 = arith.mulf %64, %59 : vector<8x128xf32>
    %66 = arith.addf %59, %65 : vector<8x128xf32>
    %cst_26 = arith.constant 0.797884583 : f32
    %67 = vector.broadcast %cst_26 : f32 to vector<8x128xf32>
    %68 = arith.mulf %67, %66 : vector<8x128xf32>
    %69 = math.tanh %68 : vector<8x128xf32>
    %cst_27 = arith.constant 1.000000e+00 : f32
    %70 = vector.broadcast %cst_27 : f32 to vector<8x128xf32>
    %71 = arith.addf %70, %69 : vector<8x128xf32>
    %72 = arith.mulf %61, %71 : vector<8x128xf32>
    %c0_28 = arith.constant 0 : index
    %c0_29 = arith.constant 0 : index
    %73 = vector.load %arg5[%c0_28, %c0_29] : memref<32x128xbf16, #tpu.memory_space<vmem>>, vector<32x128xbf16>
    %cst_30 = arith.constant dense<0.000000e+00> : vector<8x128xf32>
    %74 = tpu.matmul %57, %73, %cst_30 {dimension_numbers = #tpu.dot_dimension_numbers<[1], [0], [0], [1], [0, 0, 1, 1], [], []>} : vector<8x32xbf16>, vector<32x128xbf16>, vector<8x128xf32> -> vector<8x128xf32>
    %75 = arith.mulf %72, %74 : vector<8x128xf32>
    %76 = arith.truncf %75 : vector<8x128xf32> to vector<8x128xbf16>
    %c0_31 = arith.constant 0 : index
    %c0_32 = arith.constant 0 : index
    %77 = vector.load %arg6[%c0_31, %c0_32] : memref<128x32xbf16, #tpu.memory_space<vmem>>, vector<128x32xbf16>
    %cst_33 = arith.constant dense<0.000000e+00> : vector<8x32xf32>
    %78 = tpu.matmul %76, %77, %cst_33 {dimension_numbers = #tpu.dot_dimension_numbers<[1], [0], [0], [1], [0, 0, 1, 1], [], []>} : vector<8x128xbf16>, vector<128x32xbf16>, vector<8x32xf32> -> vector<8x32xf32>
    %79 = arith.addf %46, %78 : vector<8x32xf32>
    %c0_34 = arith.constant 0 : index
    %c0_35 = arith.constant 0 : index
    %c0_36 = arith.constant 0 : index
    %80 = vector.load %arg7[%c0_34, %c0_35, %c0_36] : memref<1x8x32xf32, #tpu.memory_space<vmem>>, vector<1x8x32xf32>
    %81 = vector.shape_cast %80 : vector<1x8x32xf32> to vector<8x32xf32>
    %82 = vector.shape_cast %79 : vector<8x32xf32> to vector<1x8x32xf32>
    tpu.vector_store %arg7[%c0_34, %c0_35, %c0_36], %82 {strides = array<i32>} : memref<1x8x32xf32, #tpu.memory_space<vmem>>, vector<1x8x32xf32>,
    return
  }
  func.func @transform_0(%arg0: i32) -> (i32, i32, i32) {
    %c0_i32 = arith.constant 0 : i32
    %c0_i32_0 = arith.constant 0 : i32
    %c0_i32_1 = arith.constant 0 : i32
    return %arg0, %c0_i32, %c0_i32_0 : i32, i32, i32
  }
  func.func @transform_1(%arg0: i32) -> (i32, i32) {
    %c0_i32 = arith.constant 0 : i32
    %c0_i32_0 = arith.constant 0 : i32
    %c0_i32_1 = arith.constant 0 : i32
    return %c0_i32, %c0_i32_0 : i32, i32
  }
  func.func @transform_2(%arg0: i32) -> (i32, i32) {
    %c0_i32 = arith.constant 0 : i32
    %c0_i32_0 = arith.constant 0 : i32
    %c0_i32_1 = arith.constant 0 : i32
    return %c0_i32, %c0_i32_0 : i32, i32
  }
  func.func @transform_3(%arg0: i32) -> (i32, i32) {
    %c0_i32 = arith.constant 0 : i32
    %c0_i32_0 = arith.constant 0 : i32
    %c0_i32_1 = arith.constant 0 : i32
    return %c0_i32, %c0_i32_0 : i32, i32
  }
  func.func @transform_4(%arg0: i32) -> (i32, i32) {
    %c0_i32 = arith.constant 0 : i32
    %c0_i32_0 = arith.constant 0 : i32
    %c0_i32_1 = arith.constant 0 : i32
    return %c0_i32, %c0_i32_0 : i32, i32
  }
  func.func @transform_5(%arg0: i32) -> (i32, i32) {
    %c0_i32 = arith.constant 0 : i32
    %c0_i32_0 = arith.constant 0 : i32
    %c0_i32_1 = arith.constant 0 : i32
    return %c0_i32, %c0_i32_0 : i32, i32
  }
  func.func @transform_6(%arg0: i32) -> (i32, i32, i32) {
    %c0_i32 = arith.constant 0 : i32
    %c0_i32_0 = arith.constant 0 : i32
    %c0_i32_1 = arith.constant 0 : i32
    return %arg0, %c0_i32, %c0_i32_0 : i32, i32, i32
  }
}

</mosaic_0001>

<bundles_post_ra>
// kernel: tpu_custom_call.1
= control target key start
LH: loop header
LB: loop body
LE: loop exit
PB: predicated region body
PF: predicated region fallthrough
CT: control target
= control target key end

     0   :  { %11 = vsyncpa [#allocation3], 0  ;;  %s1116_s0 = inlined_call_operand.vmem [shape: f32[2,8,32], index: 0, kind: input, shape index: {}]   ;;  %s1117_s1 = inlined_call_operand.vmem [shape: bf16[32,32], index: 1, kind: input, shape index: {}]   ;;  %s1118_s2 = inlined_call_operand.vmem [shape: f32[8,32], index: 2, kind: input, shape index: {}]   ;;  %s1119_s3 = inlined_call_operand.vmem [shape: bf16[32,128], index: 3, kind: input, shape index: {}]   ;;  %s1120_s4 = inlined_call_operand.vmem [shape: bf16[32,128], index: 4, kind: input, shape index: {}]   ;;  %s1121_s5 = inlined_call_operand.vmem [shape: bf16[128,32], index: 5, kind: input, shape index: {}]   ;;  %s1122_s6 = inlined_call_operand.hbm [shape: f32[2,8,32], index: 6, kind: output, shape index: {}]  }
   0x1   :  { %13 = vsyncpa [#allocation3 + $0x1], 0  ;;  %s928_s21 = smov 0   ;;  %s930_s22 = smov 0  }
   0x2   :  { %s932_s23 = smov 0   ;;  %s934_s24 = smov 0  }
   0x3 LB: > { %s949_s25 = sadd.s32 4294967295, %s888_s24   ;;  %s672_s26 = sadd.s32 4294967294, %s888_s24   ;;  %s888_s24 = sphi %s934_s24, %s1128_s24   ;;  %s884_s23 = sphi %s932_s23, %s1127_s23   ;;  %s880_s22 = sphi %s930_s22, %s1126_s22   ;;  %s876_s21 = sphi %s928_s21, %s1125_s21  }
   0x4   : > { %s953_s27 = sadd.s32 1, %s888_s24   ;;  %s157_s28 = sadd.s32 1, %s884_s23 }
   0x5   : > { %s154_s29 = ssub.s32 %s888_s24, %s953_s27  ;;  %p167_p0 = scmp.ne.s32.totalorder %s884_s23, %s880_s22 }
   0x6   : > { %p155_p1 = scmp.eq.s32.totalorder %s154_s29, 0  ;;  %p168_p2 = scmp.eq.s32.totalorder %s949_s25, 1 }
   0x7   : > { %p173_p3 = scmp.ne.s32.totalorder %s880_s22, %s876_s21  ;;  %p174_p4 = scmp.eq.s32.totalorder %s672_s26, 1 }
   0x8   : > { %s964_s30 = scalar_select %p155_p1, %s884_s23, %s157_s28  }
   0x9   : > { %p966_p5 = por %p168_p2, %p167_p0  ;;  %p970_p6 = por %p174_p4, %p173_p3 }
   0xa   : > { %p675_p7 = scmp.ge.s32.totalorder %s888_s24, 1  ;;  %p214_p8 = scmp.lt.s32.totalorder %s888_s24, 3 }
   0xc   : > { %p215_p9 = pnand %p675_p7, %p214_p8 }
   0xd   : > { %p243_p10 = scmp.lt.s32.totalorder (!%p215_p9), %s949_s25, 1  ;;  %vm250_vm0 = vcmask (!%p215_p9), 261120   ;;  %v806_v3 = vld [vmem:[%s1117_s1] sm:$0xff] (!%p215_p9)   ;;  %v890_v4 = vmov (!%p215_p9), 0.0   ;;  %vm891_vm1 = vmmov (!%p215_p9), 0   ;;  %v807_v5 = vld [vmem:[%s1117_s1 + $0x8] sm:$0xff] (!%p215_p9)   ;;  %v325_v12 = vlaneseq (!%p215_p9) }
   0xe   : > { %218 = sbr.rel (%p215_p9) target bundleno = 1048 (0x418), region = 44  ;;  %721 = vmatprep.subr.bf16.mxu0 (!%p215_p9), %v890_v4  ;;  %725 = vmatprep.mubr.msk.bf16.mxu0 (!%p215_p9), %vm891_vm1, %v890_v4  ;;  %v681_v15 = vld [vmem:[%s1118_s2] ss:$0 sm:$0xff] (!%p215_p9)  ;;  %v682_v17 = vld [vmem:[%s1118_s2 + $0x2] ss:$0 sm:$0xff] (!%p215_p9)  ;;  %v809_v39 = vld [vmem:[%s1119_s3 + $0x8] sm:$0xff] (!%p215_p9)  }
   0xf   : > { %722 = vmatpush3.bf16.msra.mxu0 (!%p215_p9), %v806_v3  ;;  %745 = vmatprep.subr.bf16.mxu1 (!%p215_p9), %v890_v4  ;;  %v326_v13 = vshrl.u32 (!%p215_p9), %v325_v12, 7  ;;  %v683_v24 = vld [vmem:[%s1118_s2 + $0x4] ss:$0 sm:$0xff] (!%p215_p9)  ;;  %v684_v29 = vld [vmem:[%s1118_s2 + $0x6] ss:$0 sm:$0xff] (!%p215_p9)  ;;  %v811_v48 = vld [vmem:[%s1120_s4 + $0x8] sm:$0xff] (!%p215_p9)  }
  0x10   : > { %723 = vmatprep.subr.bf16.mxu0 (!%p215_p9), %v890_v4  ;;  %761 = vmatprep.mubr.msk.bf16.mxu1 (!%p215_p9), %vm891_vm1, %v890_v4  ;;  %v808_v38 = vld [vmem:[%s1119_s3] sm:$0xff] (!%p215_p9)   ;;  %v813_v49 = vld [vmem:[%s1121_s5 + $0x8] sm:$0xff] (!%p215_p9)   ;;  %v814_v50 = vld [vmem:[%s1121_s5 + $0x10] sm:$0xff] (!%p215_p9)   ;;  %s240_s20 = sand.u32 (!%p215_p9), 1, %s880_s22   ;;  %s700_s28 = sshll.u32 (!%p215_p9), %s949_s25, 7 }
  0x11   : > { %vm328_vm2 = vcmp.ge.s32.totalorder (!%p215_p9), %v326_v13, 2  ;;  %vm338_vm3 = vcmp.ge.s32.totalorder (!%p215_p9), %v326_v13, 4  ;;  %vm348_vm4 = vcmp.ge.s32.totalorder (!%p215_p9), %v326_v13, 6  ;;  %v812_v40 = vld [vmem:[%s1121_s5] sm:$0xff] (!%p215_p9)   ;;  %v815_v51 = vld [vmem:[%s1121_s5 + $0x18] sm:$0xff] (!%p215_p9)   ;;  %v817_v53 = vld [vmem:[%s1121_s5 + $0x28] sm:$0xff] (!%p215_p9)   ;;  %s1073_s12 = scalar_lea.hbm (!%p215_p9), %s1122_s6, %s700_s28 }
  0x12   : > { %746 = vmatpush3.bf16.msra.mxu1 (!%p215_p9), %v812_v40  ;;  %v810_v46 = vld [vmem:[%s1120_s4] sm:$0xff] (!%p215_p9)   ;;  %v818_v54 = vld [vmem:[%s1121_s5 + $0x30] sm:$0xff] (!%p215_p9)   ;;  %v819_v55 = vld [vmem:[%s1121_s5 + $0x38] sm:$0xff] (!%p215_p9)   ;;  %s676_s26 = sshll.u32 (!%p215_p9), %s240_s20, 3  ;;  %s892_s14 = smov (!%p215_p9), [#allocation2]  }
  0x13   : > { %724 = vmatpush3.bf16.msra.mxu0 (!%p215_p9), %v807_v5  ;;  %747 = vmatprep.subr.bf16.mxu1 (!%p215_p9), %v890_v4  ;;  %v816_v52 = vld [vmem:[%s1121_s5 + $0x20] sm:$0xff] (!%p215_p9)   ;;  %s242_s29 = scalar_lea.vmem (!%p215_p9), [#allocation2], %s676_s26  ;;  %s830_s15 = sshll.u32 (!%p215_p9), %s892_s14, 4  ;;  %s831_s15 = int_to_ptr.vmem [resolvable:$false] %s830_s15 }
  0x14   : > { %729 = vmatprep.subr.bf16.mxu0 (!%p215_p9), %v890_v4  ;;  %s832_s16 = scalar_lea.vmem (!%p215_p9), %s831_s15, 256 }
  0x15   : > { %s244_s9 = scalar_select %p243_p10, %s949_s25, 1 }
  0x16   : > { %748 = vmatpush3.bf16.msra.mxu1 %v813_v49  ;;  %s600_s25 = scalar_lea.sflag [#allocation3], %s240_s20 }
  0x17   : > { %s677_s10 = sshll.u32 %s244_s9, 3  ;;  %749 = vmatprep.subr.bf16.mxu1 %v890_v4  ;;  %s613_s9 = sshll.u32 %s242_s29, 4  ;;  %s1075_s9 = int_to_ptr.vmem [resolvable:$true] %s613_s9 }
  0x18   : > { %s246_s13 = scalar_lea.vmem %s1116_s0, %s677_s10  ;;  %p833_p0 = scmp.lt.s32.totalorder %s1075_s9, %s831_s15 }
  0x19   : > { %v248_v0 = vld [vmem:[%s246_s13] sm:$0xff]  ;;  %s826_s13 = scalar_lea.vmem %s1075_s9, 128 }
  0x1a   : > { %v249_v1 = vmul.f32 %v248_v0, %v248_v0  ;;  %750 = vmatpush3.bf16.msra.mxu1 %v814_v50  ;;  %p827_p11 = scmp.ne.s32.totalorder %s1075_s9, %s826_s13  ;;  %p834_p1 = scmp.lt.s32.totalorder %s832_s16, %s826_s13 }
  0x1b   : > { %751 = vmatprep.subr.bf16.mxu1 %v890_v4 }
  0x1c   : > { %v251_v2 = vsel %vm250_vm0, %v249_v1, 0.0  ;;  %p828_p12 = pnand %p827_p11, %p966_p5  ;;  %p835_p2 = por %p834_p1, %p833_p0 }
  0x1d   : > { %252 = vadd.xlane.f32.xlu0 %v251_v2 }
  0x1e   : > { %752 = vmatpush3.bf16.msra.mxu1 %v815_v51  ;;  %p829_p13 = pneg %p828_p12 }
  0x1f   : > { %753 = vmatprep.subr.bf16.mxu1 %v890_v4 }
  0x20   : > { %p836_p3 = pnand %p835_p2, %p829_p13 }
  0x22   : > { %754 = vmatpush3.bf16.msra.mxu1 %v816_v52 }
  0x23   : > { %755 = vmatprep.subr.bf16.mxu1 %v890_v4 }
  0x26   : > { %756 = vmatpush3.bf16.msra.mxu1 %v817_v53 }
  0x27   : > { %757 = vmatprep.subr.bf16.mxu1 %v890_v4 }
  0x2a   : > { %758 = vmatpush3.bf16.msra.mxu1 %v818_v54 }
  0x2b   : > { %759 = vmatprep.subr.bf16.mxu1 %v890_v4 }
  0x2e   : > { %760 = vmatpush3.bf16.msra.mxu1 %v819_v55 }
  0xaa   : > { %v253_v6 = vpop.xlane.xlu0 %252 }
  0xab   : > { %v255_v7 = vmul.f32 0.03125, %v253_v6 }
  0xad   : > { %v256_v8 = vadd.f32 1.1920929e-07, %v255_v7 }
  0xaf   : > { %820 = vrsqrt.f32 %v256_v8 }
  0xb9   : > { %v821_v9 = vpop.eup %820 }
  0xba   : > { %v258_v10 = vmul.f32 %v821_v9, %v248_v0 }
  0xbc   : > { %v259_v11 = vpack.c.bf16 %v258_v10, %v258_v10 }
  0xbe   : > { %726 = vmatmul.mubr.msk.bf16.vlgmr.msra.gmra.mrb[0].mxu0 %vm250_vm0, %v259_v11 }
  0xbf   : > { %733 = vmatprep.mubr.msk.bf16.mxu0 %vm891_vm1, %v890_v4  ;;  %730 = vmatpush3.bf16.msra.mxu0 %v808_v38 }
  0xc0   : > { %731 = vmatprep.subr.bf16.mxu0 %v890_v4 }
  0xc3   : > { %732 = vmatpush3.bf16.msra.mxu0 %v809_v39 }
  0xc4   : > { %737 = vmatprep.subr.bf16.mxu0 %v890_v4 }
 0x191   : > { %v313_v14 = vpop.f32.mrb[0].mxu0 }
 0x192   : > { %v327_v16 = vrot.slane %v313_v14, 6  ;;  %v337_v18 = vrot.slane %v313_v14, 4  ;;  %v347_v19 = vrot.slane %v313_v14, 2  ;;  %v727_v20 = vpop.f32.mrb[1].mxu0  ;;  %v324_v26 = vmul.f32 %v681_v15, %v313_v14 }
 0x193   : > { %v316_v21 = vpop.f32.mrb[2].mxu0 }
 0x194   : > { %v329_v22 = vsel %vm328_vm2, %v327_v16, 0.0  ;;  %v339_v23 = vsel %vm338_vm3, %v337_v18, 0.0  ;;  %v728_v25 = vpop.f32.mrb[3].mxu0  ;;  %v349_v28 = vsel %vm348_vm4, %v347_v19, 0.0 }
 0x195   : > { %v335_v27 = vmul.f32 %v682_v17, %v329_v22  ;;  %v345_v31 = vmul.f32 %v683_v24, %v339_v23  ;;  %v355_v33 = vmul.f32 %v684_v29, %v349_v28 }
 0x197   : > { %v336_v30 = vadd.f32 %v335_v27, %v324_v26 }
 0x199   : > { %v346_v32 = vadd.f32 %v345_v31, %v336_v30 }
 0x19b   : > { %v356_v34 = vadd.f32 %v355_v33, %v346_v32 }
 0x19d   : > { %v1011_v35 = vadd.f32 %v356_v34, %v248_v0 }
 0x19f   : > { %v358_v36 = vmul.f32 %v1011_v35, %v1011_v35 }
 0x1a1   : > { %v359_v37 = vsel %vm250_vm0, %v358_v36, 0.0 }
 0x1a2   : > { %360 = vadd.xlane.f32.xlu0 %v359_v37 }
 0x22f   : > { %v361_v41 = vpop.xlane.xlu0 %360 }
 0x230   : > { %v362_v42 = vmul.f32 0.03125, %v361_v41 }
 0x232   : > { %v363_v43 = vadd.f32 1.1920929e-07, %v362_v42 }
 0x234   : > { %822 = vrsqrt.f32 %v363_v43 }
 0x23e   : > { %v823_v44 = vpop.eup %822 }
 0x23f   : > { %v365_v45 = vmul.f32 %v823_v44, %v1011_v35 }
 0x241   : > { %v366_v47 = vpack.c.bf16 %v365_v45, %v365_v45 }
 0x243   : > { %734 = vmatmul.mubr.msk.bf16.vlgmr.msra.gmra.mrb[4].mxu0 %vm250_vm0, %v366_v47 }
 0x244   : > { %738 = vmatpush3.bf16.msra.mxu0 %v810_v46  ;;  %741 = vmatprep.mubr.msk.bf16.mxu0 %vm891_vm1, %v890_v4 }
 0x245   : > { %739 = vmatprep.subr.bf16.mxu0 %v890_v4 }
 0x248   : > { %740 = vmatpush3.bf16.msra.mxu0 %v811_v48 }
 0x24b   : > { %742 = vmatmul.mubr.msk.bf16.vlgmr.msra.gmra.mrb[8].mxu0 %vm250_vm0, %v366_v47 }
 0x316   : > { %v420_v56 = vpop.f32.mrb[4].mxu0 }
 0x317   : > { %v427_v57 = vmul.f32 0.044715, %v420_v56  ;;  %v735_v58 = vpop.f32.mrb[5].mxu0  ;;  %v426_v6 = vmul.f32 0.5, %v420_v56 }
 0x318   : > { %v423_v59 = vpop.f32.mrb[6].mxu0 }
 0x319   : > { %v428_v60 = vmul.f32 %v427_v57, %v420_v56  ;;  %v736_v61 = vpop.f32.mrb[7].mxu0 }
 0x31b   : > { %v429_v62 = vmul.f32 %v428_v60, %v420_v56 }
 0x31d   : > { %v430_v63 = vadd.f32 %v429_v62, %v420_v56 }
 0x31e   : > { %v485_v0 = vpop.f32.mrb[8].mxu0 }
 0x31f   : > { %v431_v1 = vmul.f32 0.7978846, %v430_v63  ;;  %v743_v2 = vpop.f32.mrb[9].mxu0 }
 0x320   : > { %v488_v3 = vpop.f32.mrb[10].mxu0 }
 0x321   : > { %824 = vtanh.f32 %v431_v1  ;;  %v744_v4 = vpop.f32.mrb[11].mxu0 }
 0x32b   : > { %v825_v5 = vpop.eup %824 }
 0x32c   : > { %v433_v7 = vadd.f32 1.0, %v825_v5 }
 0x32e   : > { %v434_v8 = vmul.f32 %v433_v7, %v426_v6 }
 0x330   : > { %v491_v9 = vmul.f32 %v485_v0, %v434_v8 }
 0x332   : > { %v492_v10 = vpack.c.bf16 %v491_v9, %v491_v9 }
 0x334   : > { %762 = vmatmul.mubr.bf16.vlgmr.msra.gmra.mrb[0].mxu1 %v492_v10 }
 0x407   : > { %v591_v11 = vpop.f32.mrb[0].mxu1 }
 0x408   : > { %v597_v12 = vadd.f32 %v591_v11, %v1011_v35  ;;  %v763_v13 = vpop.f32.mrb[1].mxu1 }
 0x409   : > { %v594_v14 = vpop.f32.mrb[2].mxu1 }
 0x40a   : > { %v764_v15 = vpop.f32.mrb[3].mxu1  ;;  %598 = vst.msk [vmem:[%s242_s29] sm:$0xff] %vm250_vm0, %v597_v12 }
 0x40b   : > { %839 = shalt.err (!%p836_p3)
}
 0x40c   : > { %s840_s17 = scalar_lea.hbm %s1073_s12, 128  ;;  %s844_s20 = scalar_lea.hbm %s1122_s6, 256 }
 0x40d   : > { %p841_p4 = scmp.ne.s32.totalorder %s1073_s12, %s840_s17  ;;  %p845_p9 = scmp.lt.u32.totalorder %s1073_s12, %s1122_s6 }
 0x40e   : > { %p846_p10 = scmp.lt.u32.totalorder %s844_s20, %s840_s17  ;;  %p848_p12 = scmp.lt.u32.totalorder %s840_s17, %s1073_s12 }
 0x40f   : > { %p842_p7 = pnand %p841_p4, %p966_p5 }
 0x410   : > { %p847_p11 = por %p846_p10, %p845_p9 }
 0x411   : > { %p843_p8 = pneg %p842_p7 }
 0x412   : > { %p849_p13 = por %p848_p12, %p847_p11 }
 0x414   : > { %p850_p0 = pnand %p849_p13, %p843_p8 }
 0x416   : > { %853 = shalt.err (!%p850_p0)
}
 0x417   : > { %765 = dma.vmem_to_hbm [thread:$0]  (%p966_p5), %s1075_s9, 128, %s1073_s12, %s600_s25  }
 0x418 PF: > { %p771_p1 = scmp.ge.s32.totalorder %s888_s24, 2  ;;  %s625_s29 = sand.u32 1, %s876_s21  }
 0x419   : > { %s626_s10 = scalar_lea.sflag [#allocation3], %s625_s29 }
 0x41a   : > { %p768_p2 = pnand %p771_p1, %p970_p6 }
 0x41c   : > { %871 = dma.done.wait (!%p768_p2), %s626_s10, 128  }
 0x41d   : > { %873 = vsyncadd (!%p768_p2), %s626_s10, 4294967168  ;;  %p16_p3 = scmp.ge.s32.totalorder %s953_s27, 4   ;;  %s1125_s21 = smov %s880_s22 }
 0x41e   : > { %s1126_s22 = smov %s884_s23  ;;  %s1127_s23 = smov %s964_s30 }
 0x41f   : > { %s1128_s24 = smov %s953_s27  ;;  %18 = sbr.rel (!%p16_p3) target bundleno = 3 (0x3), region = 79 }
 0x426   :  { %631 = vsyncpa [#allocation3], 1 }
 0x427   :  { %633 = vsyncpa [#allocation3 + $0x1], 1 }

</bundles_post_ra>
